<compile_context>
chip_gen: v7x
topology: tpu7x:2x2x1
jax: 0.10.0
libtpu: 0.0.40
codegen_flags: <defaults>
</compile_context>

<pallas_src>
import functools

import jax
import jax.numpy as jnp
from jax.experimental import pallas as pl
from jax.experimental.pallas import tpu as pltpu


# ---------------------------------------------------------------------------
# Kernel
# ---------------------------------------------------------------------------
def _stats_pool_kernel(len_ref, x_ref, o_ref, sum_ref, sq_ref=None, *,
                       pool_mode, eps, unbiased, clamp_before_sqrt,
                       t_tile, feat_dim):
    """Grid = (B, num_T_tiles). Accumulate Σx / Σx² over T, finalize on last step."""
    b = pl.program_id(0)
    t = pl.program_id(1)
    n_t = pl.num_programs(1)

    # -- init accumulators at the start of each batch row's reduction ----------
    @pl.when(t == 0)
    def _init():
        sum_ref[...] = jnp.zeros_like(sum_ref)
        if pool_mode == "xvector":
            sq_ref[...] = jnp.zeros_like(sq_ref)

    # -- streamed accumulation (VPU only; mask is (1, T_TILE), bcast over D) ----
    x = x_ref[0].astype(jnp.float32)                     # (D, T_TILE)
    length = len_ref[b]                                  # scalar int32 from SMEM
    t_idx = jax.lax.broadcasted_iota(jnp.int32, (1, t_tile), 1) + t * t_tile
    valid = t_idx < length                               # (1, T_TILE)
    xm = jnp.where(valid, x, 0.0)                        # masks OOB padding too
    sum_ref[...] += xm
    if pool_mode == "xvector":
        sq_ref[...] += xm * xm

    # -- finalize: single cross-lane reduce + mean/std + store ------------------
    @pl.when(t == n_t - 1)
    def _finalize():
        n = length.astype(jnp.float32)
        eps_f = jnp.float32(eps)
        total = jnp.sum(sum_ref[...], axis=-1, keepdims=True)       # (D, 1)
        mean = total / n                                            # (D, 1)
        if pool_mode == "xvector":
            c = jnp.float32(1.0 if unbiased else 0.0)
            total_sq = jnp.sum(sq_ref[...], axis=-1, keepdims=True)  # (D, 1)
            var = (total_sq - n * mean * mean) / (n - c)
            if clamp_before_sqrt:
                # torch masked branch: .clamp(min=eps).sqrt()
                std = jnp.sqrt(jnp.maximum(var, eps_f))
            else:
                # torch no-length branch: std().clamp(min=eps)
                # (clamp var at 0 first: one-pass cancellation can go tiny-negative)
                std = jnp.maximum(jnp.sqrt(jnp.maximum(var, 0.0)), eps_f)
            o_ref[0, :, 0:feat_dim] = mean.reshape(1, feat_dim).astype(o_ref.dtype)
            o_ref[0, :, feat_dim:] = std.reshape(1, feat_dim).astype(o_ref.dtype)
        else:
            o_ref[0, :, :] = mean.reshape(1, feat_dim).astype(o_ref.dtype)


# ---------------------------------------------------------------------------
# Tile-size heuristic (bounds the streamed VMEM working set)
# ---------------------------------------------------------------------------
def _choose_t_tile(T, D, itemsize, n_acc, budget_bytes=12 * 1024 * 1024):
    # bytes per (d, t) column element: double-buffered input + f32 accumulators
    bytes_per_elem = 2 * itemsize + 4 * n_acc
    max_elems = max(budget_bytes // bytes_per_elem, 1)
    if D * T <= max_elems or T < 128:
        return T                                   # whole T fits (or too short to tile)
    t = max(128, (max_elems // D) // 128 * 128)    # lane-aligned tile
    return T if t >= T else t


# ---------------------------------------------------------------------------
# Wrapper (the "module" forward)
# ---------------------------------------------------------------------------
def stats_pool_layer(encoder_output, length=None, *, pool_mode="xvector",
                     eps=1e-10, unbiased=True, t_tile=None):
    """StatsPoolLayer.forward: encoder_output [B, D, T] -> [B, D or 2D].

    `t_tile` (optional override) must be a multiple of 128 or equal to T.
    """
    if pool_mode not in ("xvector", "tap"):
        raise ValueError(f"Pool mode must be one of {{'xvector','tap'}}; got '{pool_mode}'")
    B, D, T = encoder_output.shape
    out_dim = 2 * D if pool_mode == "xvector" else D
    n_acc = 2 if pool_mode == "xvector" else 1

    if t_tile is None:
        t_tile = _choose_t_tile(T, D, encoder_output.dtype.itemsize, n_acc)
    n_t = pl.cdiv(T, t_tile)

    if length is None:
        lengths = jnp.full((B,), T, dtype=jnp.int32)
        clamp_before_sqrt = False       # torch: std().clamp(min=eps)
    else:
        lengths = length.astype(jnp.int32).reshape(B)
        clamp_before_sqrt = True        # torch: var.clamp(min=eps).sqrt()

    kern = functools.partial(
        _stats_pool_kernel, pool_mode=pool_mode, eps=eps, unbiased=unbiased,
        clamp_before_sqrt=clamp_before_sqrt, t_tile=t_tile, feat_dim=D)

    scratch = [pltpu.VMEM((D, t_tile), jnp.float32)]
    if pool_mode == "xvector":
        scratch.append(pltpu.VMEM((D, t_tile), jnp.float32))

    grid_spec = pltpu.PrefetchScalarGridSpec(
        num_scalar_prefetch=1,                 # lengths -> SMEM
        grid=(B, n_t),
        in_specs=[pl.BlockSpec((1, D, t_tile), lambda b, t, lens: (b, 0, t))],
        out_specs=pl.BlockSpec((1, 1, out_dim), lambda b, t, lens: (b, 0, 0)),
        scratch_shapes=scratch,
    )

    out = pl.pallas_call(
        kern,
        out_shape=jax.ShapeDtypeStruct((B, 1, out_dim), encoder_output.dtype),
        grid_spec=grid_spec,
        compiler_params=pltpu.CompilerParams(
            dimension_semantics=("parallel", "arbitrary"),
            vmem_limit_bytes=32 * 1024 * 1024),
    )(lengths, encoder_output)
    return out.reshape(B, out_dim)


# ---------------------------------------------------------------------------
# Pure-JAX reference (mirrors the PyTorch forward exactly; two-pass variance)
# ---------------------------------------------------------------------------
def _reference(encoder_output, length=None, *, pool_mode="xvector",
               eps=1e-10, unbiased=True):
    x = encoder_output.astype(jnp.float32)
    B, D, T = x.shape
    if length is None:
        mean = x.mean(axis=-1)
        if pool_mode == "xvector":
            c = 1 if unbiased else 0
            var = jnp.sum((x - mean[..., None]) ** 2, axis=-1) / (T - c)
            std = jnp.maximum(jnp.sqrt(var), eps)
            return jnp.concatenate([mean, std], axis=-1).astype(encoder_output.dtype)
        return mean.astype(encoder_output.dtype)
    else:
        li = length.astype(jnp.int32)
        lf = length.astype(jnp.float32)
        t = jnp.arange(T)[None, None, :]
        valid = t < li[:, None, None]
        xm = jnp.where(valid, x, 0.0)
        means = xm.sum(axis=-1) / lf[:, None]
        if pool_mode == "xvector":
            c = 1 if unbiased else 0
            diff = jnp.where(valid, xm - means[..., None], 0.0)
            var = jnp.sum(diff ** 2, axis=-1) / (lf[:, None] - c)
            std = jnp.sqrt(jnp.maximum(var, eps))
            return jnp.concatenate([means, std], axis=-1).astype(encoder_output.dtype)
        return means.astype(encoder_output.dtype)


# ---------------------------------------------------------------------------
if __name__ == "__main__":
    key = jax.random.PRNGKey(0)
    k1, k2 = jax.random.split(key)

    # --- small single-T-tile case -----------------------------------------
    B, D, T = 2, 16, 32
    x = jax.random.normal(k1, (B, D, T), dtype=jnp.float32)
    lengths = jnp.array([32, 20], dtype=jnp.int32)

    out = jax.block_until_ready(stats_pool_layer(x, pool_mode="xvector"))
    ref = _reference(x, pool_mode="xvector")
    assert out.shape == (B, 2 * D)
    assert jnp.allclose(out, ref, atol=1e-4, rtol=1e-4)

    out = jax.block_until_ready(stats_pool_layer(x, lengths, pool_mode="xvector"))
    ref = _reference(x, lengths, pool_mode="xvector")
    assert out.shape == (B, 2 * D)
    assert jnp.allclose(out, ref, atol=1e-4, rtol=1e-4)

    out = jax.block_until_ready(stats_pool_layer(x, pool_mode="tap"))
    ref = _reference(x, pool_mode="tap")
    assert out.shape == (B, D)
    assert jnp.allclose(out, ref, atol=1e-4, rtol=1e-4)

    # --- multi-T-tile case (ragged last tile exercises the grid reduction) --
    B2, D2, T2 = 2, 16, 288
    x2 = jax.random.normal(k2, (B2, D2, T2), dtype=jnp.float32)
    lengths2 = jnp.array([288, 200], dtype=jnp.int32)

    out = jax.block_until_ready(stats_pool_layer(x2, pool_mode="xvector", t_tile=128))
    ref = _reference(x2, pool_mode="xvector")
    assert jnp.allclose(out, ref, atol=1e-4, rtol=1e-4)

    out = jax.block_until_ready(stats_pool_layer(x2, lengths2, pool_mode="xvector", t_tile=128))
    ref = _reference(x2, lengths2, pool_mode="xvector")
    assert jnp.allclose(out, ref, atol=1e-4, rtol=1e-4)

    out = jax.block_until_ready(stats_pool_layer(x2, lengths2, pool_mode="tap", t_tile=128))
    ref = _reference(x2, lengths2, pool_mode="tap")
    assert jnp.allclose(out, ref, atol=1e-4, rtol=1e-4)

    print("KERNEL_OK")
</pallas_src>

<mosaic_0001>
module attributes {stable_mosaic.version = 11 : i64} {
  func.func @_stats_pool_kernel(%arg0: i32, %arg1: i32, %arg2: memref<2xi32, #tpu.memory_space<smem>>, %arg3: memref<1x16x32xf32, #tpu.memory_space<vmem>>, %arg4: memref<1x1x32xf32, #tpu.memory_space<vmem>>, %arg5: memref<16x32xf32, #tpu.memory_space<vmem>>, %arg6: memref<16x32xf32, #tpu.memory_space<vmem>>) attributes {dimension_semantics = [#tpu.dimension_semantics<parallel>, #tpu.dimension_semantics<arbitrary>], iteration_bounds = array<i64: 2, 1>, scalar_prefetch = 1 : i64, scratch_operands = 2 : i64, tpu.core_type = #tpu.core_type<tc>, window_params = [{transform_indices = @transform_0, window_bounds = array<i64: 1, 16, 32>}, {transform_indices = @transform_1, window_bounds = array<i64: 1, 1, 32>}]} {
    %c0_i32 = arith.constant 0 : i32
    %0 = arith.cmpi eq, %arg1, %c0_i32 : i32
    %1 = arith.extui %0 : i1 to i32
    %c0_i32_0 = arith.constant 0 : i32
    %2 = arith.cmpi ne, %1, %c0_i32_0 : i32
    scf.if %2 {
      %cst_13 = arith.constant 0.000000e+00 : f32
      %27 = vector.broadcast %cst_13 : f32 to vector<16x32xf32>
      %c0_14 = arith.constant 0 : index
      %c0_15 = arith.constant 0 : index
      %28 = vector.load %arg5[%c0_14, %c0_15] : memref<16x32xf32, #tpu.memory_space<vmem>>, vector<16x32xf32>
      tpu.vector_store %arg5[%c0_14, %c0_15], %27 {strides = array<i32>} : memref<16x32xf32, #tpu.memory_space<vmem>>, vector<16x32xf32>,
      %cst_16 = arith.constant 0.000000e+00 : f32
      %29 = vector.broadcast %cst_16 : f32 to vector<16x32xf32>
      %c0_17 = arith.constant 0 : index
      %c0_18 = arith.constant 0 : index
      %30 = vector.load %arg6[%c0_17, %c0_18] : memref<16x32xf32, #tpu.memory_space<vmem>>, vector<16x32xf32>
      tpu.vector_store %arg6[%c0_17, %c0_18], %29 {strides = array<i32>} : memref<16x32xf32, #tpu.memory_space<vmem>>, vector<16x32xf32>,
    } else {
    }
    %c0 = arith.constant 0 : index
    %c0_1 = arith.constant 0 : index
    %c0_2 = arith.constant 0 : index
    %3 = vector.load %arg3[%c0, %c0_1, %c0_2] : memref<1x16x32xf32, #tpu.memory_space<vmem>>, vector<1x16x32xf32>
    %4 = vector.shape_cast %3 : vector<1x16x32xf32> to vector<16x32xf32>
    %5 = arith.index_cast %arg0 : i32 to index
    %6 = memref.load %arg2[%5] : memref<2xi32, #tpu.memory_space<smem>>
    %7 = tpu.iota {dimensions = array<i32: 1>} : vector<1x32xi32>
    %c32_i32 = arith.constant 32 : i32
    %8 = arith.muli %arg1, %c32_i32 : i32
    %9 = vector.broadcast %8 : i32 to vector<1x32xi32>
    %10 = arith.addi %7, %9 : vector<1x32xi32>
    %11 = vector.broadcast %6 : i32 to vector<1x32xi32>
    %12 = arith.cmpi slt, %10, %11 : vector<1x32xi32>
    %cst = arith.constant 0.000000e+00 : f32
    %13 = vector.shape_cast %12 : vector<1x32xi1> to vector<1x32xi1>
    %14 = vector.broadcast %13 : vector<1x32xi1> to vector<16x32xi1>
    %15 = vector.broadcast %cst : f32 to vector<16x32xf32>
    %16 = arith.select %14, %4, %15 : vector<16x32xi1>, vector<16x32xf32>
    %c0_3 = arith.constant 0 : index
    %c0_4 = arith.constant 0 : index
    %17 = vector.load %arg5[%c0_3, %c0_4] : memref<16x32xf32, #tpu.memory_space<vmem>>, vector<16x32xf32>
    %18 = arith.addf %17, %16 : vector<16x32xf32>
    %c0_5 = arith.constant 0 : index
    %c0_6 = arith.constant 0 : index
    %19 = vector.load %arg5[%c0_5, %c0_6] : memref<16x32xf32, #tpu.memory_space<vmem>>, vector<16x32xf32>
    tpu.vector_store %arg5[%c0_5, %c0_6], %18 {strides = array<i32>} : memref<16x32xf32, #tpu.memory_space<vmem>>, vector<16x32xf32>,
    %c0_7 = arith.constant 0 : index
    %c0_8 = arith.constant 0 : index
    %20 = vector.load %arg6[%c0_7, %c0_8] : memref<16x32xf32, #tpu.memory_space<vmem>>, vector<16x32xf32>
    %21 = arith.mulf %16, %16 : vector<16x32xf32>
    %22 = arith.addf %20, %21 : vector<16x32xf32>
    %c0_9 = arith.constant 0 : index
    %c0_10 = arith.constant 0 : index
    %23 = vector.load %arg6[%c0_9, %c0_10] : memref<16x32xf32, #tpu.memory_space<vmem>>, vector<16x32xf32>
    tpu.vector_store %arg6[%c0_9, %c0_10], %22 {strides = array<i32>} : memref<16x32xf32, #tpu.memory_space<vmem>>, vector<16x32xf32>,
    %c0_i32_11 = arith.constant 0 : i32
    %24 = arith.cmpi eq, %arg1, %c0_i32_11 : i32
    %25 = arith.extui %24 : i1 to i32
    %c0_i32_12 = arith.constant 0 : i32
    %26 = arith.cmpi ne, %25, %c0_i32_12 : i32
    scf.if %26 {
      %27 = arith.sitofp %6 : i32 to f32
      %c0_13 = arith.constant 0 : index
      %c0_14 = arith.constant 0 : index
      %28 = vector.load %arg5[%c0_13, %c0_14] : memref<16x32xf32, #tpu.memory_space<vmem>>, vector<16x32xf32>
      %cst_15 = arith.constant dense<0.000000e+00> : vector<16xf32>
      %29 = vector.multi_reduction <add>, %28, %cst_15 [1] : vector<16x32xf32> to vector<16xf32>
      %30 = vector.shape_cast %29 : vector<16xf32> to vector<16x1xf32>
      %31 = vector.broadcast %27 : f32 to vector<16x1xf32>
      %32 = arith.divf %30, %31 : vector<16x1xf32>
      %c0_16 = arith.constant 0 : index
      %c0_17 = arith.constant 0 : index
      %33 = vector.load %arg6[%c0_16, %c0_17] : memref<16x32xf32, #tpu.memory_space<vmem>>, vector<16x32xf32>
      %cst_18 = arith.constant dense<0.000000e+00> : vector<16xf32>
      %34 = vector.multi_reduction <add>, %33, %cst_18 [1] : vector<16x32xf32> to vector<16xf32>
      %35 = vector.shape_cast %34 : vector<16xf32> to vector<16x1xf32>
      %36 = vector.broadcast %27 : f32 to vector<16x1xf32>
      %37 = arith.mulf %36, %32 : vector<16x1xf32>
      %38 = arith.mulf %37, %32 : vector<16x1xf32>
      %39 = arith.subf %35, %38 : vector<16x1xf32>
      %cst_19 = arith.constant 1.000000e+00 : f32
      %40 = arith.subf %27, %cst_19 : f32
      %41 = vector.broadcast %40 : f32 to vector<16x1xf32>
      %42 = arith.divf %39, %41 : vector<16x1xf32>
      %cst_20 = arith.constant 0.000000e+00 : f32
      %43 = vector.broadcast %cst_20 : f32 to vector<16x1xf32>
      %44 = arith.maximumf %42, %43 : vector<16x1xf32>
      %45 = math.sqrt %44 : vector<16x1xf32>
      %cst_21 = arith.constant 1.000000e-10 : f32
      %46 = vector.broadcast %cst_21 : f32 to vector<16x1xf32>
      %47 = arith.maximumf %45, %46 : vector<16x1xf32>
      %48 = vector.shape_cast %32 : vector<16x1xf32> to vector<1x16xf32>
      %c0_22 = arith.constant 0 : index
      %c0_23 = arith.constant 0 : index
      %c0_24 = arith.constant 0 : index
      %49 = vector.load %arg4[%c0_22, %c0_23, %c0_24] : memref<1x1x32xf32, #tpu.memory_space<vmem>>, vector<1x1x16xf32>
      %50 = vector.shape_cast %49 : vector<1x1x16xf32> to vector<1x16xf32>
      %51 = vector.shape_cast %48 : vector<1x16xf32> to vector<1x1x16xf32>
      tpu.vector_store %arg4[%c0_22, %c0_23, %c0_24], %51 {strides = array<i32>} : memref<1x1x32xf32, #tpu.memory_space<vmem>>, vector<1x1x16xf32>,
      %52 = vector.shape_cast %47 : vector<16x1xf32> to vector<1x16xf32>
      %c0_25 = arith.constant 0 : index
      %c0_26 = arith.constant 0 : index
      %c16 = arith.constant 16 : index
      %53 = vector.load %arg4[%c0_25, %c0_26, %c16] : memref<1x1x32xf32, #tpu.memory_space<vmem>>, vector<1x1x16xf32>
      %54 = vector.shape_cast %53 : vector<1x1x16xf32> to vector<1x16xf32>
      %55 = vector.shape_cast %52 : vector<1x16xf32> to vector<1x1x16xf32>
      tpu.vector_store %arg4[%c0_25, %c0_26, %c16], %55 {strides = array<i32>} : memref<1x1x32xf32, #tpu.memory_space<vmem>>, vector<1x1x16xf32>,
    } else {
    }
    return
  }
  func.func @transform_0(%arg0: i32, %arg1: i32, %arg2: memref<2xi32, #tpu.memory_space<smem>>) -> (i32, i32, i32) {
    %c0_i32 = arith.constant 0 : i32
    %c0_i32_0 = arith.constant 0 : i32
    return %arg0, %c0_i32, %arg1 : i32, i32, i32
  }
  func.func @transform_1(%arg0: i32, %arg1: i32, %arg2: memref<2xi32, #tpu.memory_space<smem>>) -> (i32, i32, i32) {
    %c0_i32 = arith.constant 0 : i32
    %c0_i32_0 = arith.constant 0 : i32
    %c0_i32_1 = arith.constant 0 : i32
    return %arg0, %c0_i32, %c0_i32_0 : i32, i32, i32
  }
}

</mosaic_0001>

<bundles_post_ra>
// kernel: tpu_custom_call.1
= control target key start
LH: loop header
LB: loop body
LE: loop exit
PB: predicated region body
PF: predicated region fallthrough
CT: control target
= control target key end

     0   :  { %s816_s0 = inlined_call_operand.hbm [shape: s32[2], index: 0, kind: input, shape index: {}]   ;;  %s817_s1 = inlined_call_operand.hbm [shape: f32[2,16,32], index: 1, kind: input, shape index: {}]   ;;  %s818_s2 = inlined_call_operand.hbm [shape: f32[2,1,32], index: 2, kind: output, shape index: {}]  }
   0x1   :  { %s455_s11 = scalar_lea.hbm %s816_s0, 16 }
   0x2   :  { %p456_p0 = scmp.ne.s32.totalorder %s816_s0, %s455_s11  ;;  %p459_p1 = scmp.lt.u32.totalorder %s455_s11, %s816_s0 }
   0x4   :  { %p461_p2 = pnand %p459_p1, %p456_p0 }
   0x6   :  { %464 = shalt.err (!%p461_p2)  }
   0x7   :  { %s581_s16 = smov [#allocation5]  }
   0x8   :  { %8 = dma.hbm_to_smem %s816_s0, 16, %s581_s16, [#allocation4] }
   0x9   :  { %547 = dma.done.wait [#allocation4], 16 }
   0xa   :  { %548 = vsyncadd [#allocation4], 4294967280 }
   0xb   :  { %10 = sfence }
   0xc   :  { %11 = vsyncpa [#allocation7], 0 }
   0xd   :  { %13 = vsyncpa [#allocation7 + $0x1], 0 }
   0xe   :  { %14 = vsyncpa [#allocation8], 0 }
   0xf   :  { %16 = vsyncpa [#allocation8 + $0x1], 0  ;;  %s614_s19 = smov 0   ;;  %s616_s20 = smov 0  }
  0x10   :  { %s618_s21 = smov 0   ;;  %s620_s22 = smov 0  }
  0x11   :  { %s622_s23 = smov 0   ;;  %s624_s24 = smov 0  }
  0x12 LB: > { %s367_s0 = sadd.s32 4294967295, %s579_s24   ;;  %s368_s25 = sadd.s32 4294967294, %s579_s24   ;;  %s579_s24 = sphi %s624_s24, %s22_s24   ;;  %s575_s23 = sphi %s622_s23, %s833_s23   ;;  %s571_s22 = sphi %s620_s22, %s832_s22   ;;  %s567_s21 = sphi %s618_s21, %s831_s21   ;;  %s563_s20 = sphi %s616_s20, %s830_s20   ;;  %s559_s19 = sphi %s614_s19, %s829_s19  }
  0x13   : > { %s34_s26 = sadd.s32 1, %s575_s23  ;;  %s43_s27 = sadd.s32 1, %s567_s21 }
  0x14   : > { %p36_p3 = scmp.ge.s32.totalorder %s34_s26, 2  ;;  %p50_p4 = scmp.ne.s32.totalorder %s567_s21, %s563_s20 }
  0x15   : > { %p51_p5 = scmp.eq.s32.totalorder %s579_s24, 0  ;;  %p56_p6 = scmp.ne.s32.totalorder %s563_s20, %s559_s19 }
  0x16   : > { %s835_s26 = smov (%p36_p3, %s34_s26), 0  ;;  %p57_p8 = scmp.eq.s32.totalorder %s367_s0, 0 }
  0x17   : > { %p655_p7 = por %p51_p5, %p50_p4  ;;  %s38_s29 = ssub.s32 %s575_s23, %s835_s26 }
  0x18   : > { %p80_p9 = scmp.eq.s32.totalorder %s367_s0, 1  ;;  %p41_p10 = scmp.eq.s32.totalorder %s38_s29, 0 }
  0x19   : > { %p661_p11 = por %p57_p8, %p56_p6  ;;  %p86_p13 = scmp.eq.s32.totalorder %s368_s25, 1 }
  0x1a   : > { %p665_p12 = por %p80_p9, %p50_p4  ;;  %p393_p2 = scmp.lt.s32.totalorder %s579_s24, 2 }
  0x1b   : > { %s670_s4 = scalar_select %p41_p10, %s567_s21, %s43_s27  }
  0x1c   : > { %s822_s3 = scalar_select %p665_p12, 1, 0 }
  0x1d   : > { %p672_p0 = por %p86_p13, %p56_p6  ;;  %s106_s6 = sand.u32 1, %s567_s21  }
  0x1e   : > { %s371_s7 = sshll.u32 %s106_s6, 4  ;;  %s380_s8 = sshll.u32 %s575_s23, 8 }
  0x1f   : > { %s823_s5 = scalar_select %p672_p0, 1, 0 }
  0x20   : > { %s683_s11 = scalar_lea.hbm %s817_s1, %s380_s8  ;;  %s110_s12 = scalar_lea.vmem [#allocation6], %s371_s7 }
  0x21   : > { %s118_s13 = sshll.u32 %s110_s12, 4  ;;  %p689_p3 = pnand %p393_p2, %p655_p7  ;;  %s685_s13 = int_to_ptr.vmem [resolvable:$true] %s118_s13 }
  0x22   : > { %s694_s15 = scalar_lea.sflag [#allocation7], %s106_s6  ;;  %s465_s16 = scalar_lea.hbm %s683_s11, 256 }
  0x23   : > { %p466_p5 = scmp.ne.s32.totalorder %s683_s11, %s465_s16  ;;  %p467_p6 = pneg %p689_p3 }
  0x24   : > { %s470_s0 = scalar_lea.hbm %s817_s1, 512  ;;  %p471_p7 = scmp.lt.u32.totalorder %s683_s11, %s817_s1 }
  0x25   : > { %p468_p8 = pnand %p467_p6, %p466_p5  ;;  %p472_p10 = scmp.lt.u32.totalorder %s470_s0, %s465_s16 }
  0x26   : > { %p474_p2 = scmp.lt.u32.totalorder %s465_s16, %s683_s11 }
  0x27   : > { %p469_p9 = pneg %p468_p8  ;;  %p473_p13 = por %p472_p10, %p471_p7 }
  0x29   : > { %p475_p1 = por %p474_p2, %p473_p13 }
  0x2b   : > { %p476_p4 = pnand %p475_p1, %p469_p9 }
  0x2d   : > { %479 = shalt.err (!%p476_p4)
}
  0x2e   : > { %s480_s28 = scalar_lea.vmem %s685_s13, 256  ;;  %s582_s29 = smov [#allocation6]  }
  0x2f   : > { %p481_p5 = scmp.ne.s32.totalorder %s685_s13, %s480_s28  ;;  %s485_s6 = sshll.u32 %s582_s29, 4  ;;  %s486_s6 = int_to_ptr.vmem [resolvable:$false] %s485_s6 }
  0x30   : > { %s487_s7 = scalar_lea.vmem %s486_s6, 512  ;;  %p488_p12 = scmp.lt.s32.totalorder %s685_s13, %s486_s6 }
  0x31   : > { %p483_p8 = pnand %p481_p5, %p467_p6  ;;  %p489_p7 = scmp.lt.s32.totalorder %s487_s7, %s480_s28 }
  0x33   : > { %p484_p0 = pneg %p483_p8  ;;  %p490_p10 = por %p489_p7, %p488_p12 }
  0x35   : > { %p491_p13 = pnand %p490_p10, %p484_p0 }
  0x37   : > { %494 = shalt.err (!%p491_p13)
}
  0x38   : > { %s583_s8 = smov 128   ;;  %s584_s9 = smov 8  }
  0x39   : > { %388 = dma.hbm_to_vmem [thread:$0]  (!%p689_p3), %s683_s11, 256, %s685_s13, %s694_s15, %s583_s8, %s583_s8, %s584_s9  }
  0x3a   : > { %p126_p1 = scmp.lt.s32.totalorder %s579_s24, 3  ;;  %p825_p4 = scmp.ge.s32.totalorder %s579_s24, 1 }
  0x3c   : > { %p127_p6 = pnand %p825_p4, %p126_p1 }
  0x3d   : > { %s726_s10 = sand.u32 (!%p127_p6), 1, %s563_s20  }
  0x3e   : > { %130 = sbr.rel (%p127_p6) target bundleno = 282 (0x11a), region = 24  ;;  %s375_s12 = sshll.u32 (!%p127_p6), %s726_s10, 4 }
  0x3f   : > { %s133_s16 = scalar_lea.sflag (!%p127_p6), [#allocation7], %s726_s10  ;;  %s136_s17 = scalar_lea.vmem (!%p127_p6), [#allocation6], %s375_s12 }
  0x45   : > { %550 = dma.done.wait (%p661_p11), %s133_s16, 256  }
  0x46   : > { %552 = vsyncadd (%p661_p11), %s133_s16, 4294967040  ;;  %vm158_vm0 = vcmask 261120   ;;  %v166_v0 = vlaneseq  ;;  %v585_v1 = vmov 0.0   ;;  %s736_s11 = sld [smem:[#allocation5 + %s571_s22]]  ;;  %v163_v5 = vld [vmem:[%s136_s17] sm:$0xff]  ;;  %v164_v7 = vld [vmem:[%s136_s17 + $0x8] sm:$0xff] }
  0x47   : > { %159 = vst.msk [vmem:[#allocation2] sm:$0xff] %vm158_vm0, %v585_v1  ;;  %160 = vst.msk [vmem:[#allocation2 + $0x8] sm:$0xff] %vm158_vm0, %v585_v1  ;;  %vm256_vm2 = vcmask 130112   ;;  %vm259_vm3 = vcmask 122880   ;;  %s758_s14 = scalar_lea.vmem [#allocation9], %s726_s10  ;;  %s377_s15 = sshll.u32 %s571_s22, 4 }
  0x48   : > { %161 = vst.msk [vmem:[#allocation3] sm:$0xff] %vm158_vm0, %v585_v1  ;;  %162 = vst.msk [vmem:[#allocation3 + $0x8] sm:$0xff] %vm158_vm0, %v585_v1  ;;  %v167_v2 = vand.u32 127, %v166_v0  ;;  %v741_v3 = vshrl.u32 %v166_v0, 7  ;;  %s291_s18 = sshll.u32 %s758_s14, 4  ;;  %vm273_vm8 = vcmask 261312   ;;  %s766_s27 = scalar_lea.hbm %s818_s2, %s377_s15  ;;  %s768_s18 = int_to_ptr.vmem [resolvable:$true] %s291_s18 }
  0x49   : > { %vm276_vm9 = vcmask 254080   ;;  %s279_s28 = scalar_lea.sflag [#allocation8], %s726_s10  ;;  %s495_s29 = scalar_lea.vmem %s768_s18, 16 }
  0x4a   : > { %v249_v4 = vsub.s32 %v167_v2, %v741_v3  ;;  %v251_v28 = vadd.s32 4294967288, %v167_v2  ;;  %v263_v30 = vadd.s32 4294967280, %v167_v2  ;;  %v268_v32 = vadd.s32 4294967272, %v167_v2  ;;  %p496_p11 = scmp.ne.s32.totalorder %s768_s18, %s495_s29  ;;  %p826_p12 = scmp.ne.s32.totalorder %s822_s3, 0 }
  0x4b   : > { %s586_s22 = smov [#allocation9]  }
  0x4c   : > { %v171_v6 = vstv %s736_s11  ;;  %v254_v29 = vsub.s32 %v251_v28, %v741_v3  ;;  %v266_v31 = vsub.s32 %v263_v30, %v741_v3  ;;  %v271_v33 = vsub.s32 %v268_v32, %v741_v3  ;;  %s195_s30 = scvt.s32.f32 %s736_s11  ;;  %p497_p0 = pnand %p496_p11, %p826_p12 }
  0x4d   : > { %vm172_vm1 = vcmp.lt.s32.totalorder %v167_v2, %v171_v6  ;;  %s499_s6 = sshll.u32 %s586_s22, 4  ;;  %s500_s6 = int_to_ptr.vmem [resolvable:$false] %s499_s6 }
  0x4e   : > { %v177_v8 = vld [vmem:[#allocation2] sm:$0xff]  ;;  %v178_v9 = vld [vmem:[#allocation2 + $0x8] sm:$0xff]  ;;  %v175_v10 = vsel %vm172_vm1, %v163_v5, 0.0  ;;  %v176_v11 = vsel %vm172_vm1, %v164_v7, 0.0  ;;  %v204_v34 = vstv %s195_s30  ;;  %s376_s13 = sadd.f32 -1.0, %s195_s30  ;;  %p498_p3 = pneg %p497_p0 }
  0x4f   : > { %v184_v12 = vld [vmem:[#allocation3] sm:$0xff]  ;;  %v185_v13 = vld [vmem:[#allocation3 + $0x8] sm:$0xff]  ;;  %v179_v14 = vadd.f32 %v177_v8, %v175_v10  ;;  %v180_v15 = vadd.f32 %v178_v9, %v176_v11  ;;  %v186_v16 = vmul.f32 %v175_v10, %v175_v10  ;;  %v187_v17 = vmul.f32 %v176_v11, %v176_v11  ;;  %s501_s7 = scalar_lea.vmem %s500_s6, 32  ;;  %p502_p9 = scmp.lt.s32.totalorder %s768_s18, %s500_s6 }
  0x50   : > { %447 = vrcp.f32 %v204_v34  ;;  %v223_v35 = vstv %s376_s13  ;;  %p503_p2 = scmp.lt.s32.totalorder %s501_s7, %s495_s29 }
  0x51   : > { %182 = vst.msk [vmem:[#allocation2] sm:$0xff] %vm158_vm0, %v179_v14  ;;  %183 = vst.msk [vmem:[#allocation2 + $0x8] sm:$0xff] %vm158_vm0, %v180_v15  ;;  %v188_v18 = vadd.f32 %v186_v16, %v184_v12  ;;  %v189_v19 = vadd.f32 %v187_v17, %v185_v13  ;;  %449 = vrcp.f32 %v223_v35 }
  0x52   : > { %p504_p5 = por %p503_p2, %p502_p9 }
  0x53   : > { %190 = vst.msk [vmem:[#allocation3] sm:$0xff] %vm158_vm0, %v188_v18  ;;  %191 = vst.msk [vmem:[#allocation3 + $0x8] sm:$0xff] %vm158_vm0, %v189_v19 }
  0x54   : > { %p505_p8 = pnand %p504_p5, %p498_p3 }
  0x58   : > { %v196_v20 = vld [vmem:[#allocation2] sm:$0xff]  ;;  %v197_v21 = vld [vmem:[#allocation2 + $0x8] sm:$0xff] }
  0x59   : > { %v198_v22 = vsel %vm158_vm0, %v196_v20, 0.0  ;;  %v201_v25 = vsel %vm158_vm0, %v197_v21, 0.0 }
  0x5a   : > { %199 = vadd.xlane.f32.xlu0 %v198_v22  ;;  %v208_v23 = vld [vmem:[#allocation3] sm:$0xff]  ;;  %v209_v24 = vld [vmem:[#allocation3 + $0x8] sm:$0xff]  ;;  %v448_v36 = vpop.eup %447 }
  0x5b   : > { %v210_v26 = vsel %vm158_vm0, %v208_v23, 0.0  ;;  %v213_v27 = vsel %vm158_vm0, %v209_v24, 0.0  ;;  %v450_v45 = vpop.eup %449 }
  0x5c   : > { %211 = vadd.xlane.f32.xlu1 %v210_v26 }
  0x5e   : > { %202 = vadd.xlane.f32.xlu0 %v201_v25 }
  0x60   : > { %214 = vadd.xlane.f32.xlu1 %v213_v27 }
  0xe7   : > { %v200_v37 = vpop.xlane.xlu0 %199 }
  0xe8   : > { %v206_v38 = vmul.f32 %v448_v36, %v200_v37 }
  0xe9   : > { %v212_v39 = vpop.xlane.xlu1 %211 }
  0xea   : > { %v250_v40 = vrot.slane %v206_v38, %v249_v4  ;;  %v216_v41 = vmul.f32 %v206_v38, %v204_v34 }
  0xeb   : > { %v203_v42 = vpop.xlane.xlu0 %202 }
  0xec   : > { %v207_v43 = vmul.f32 %v448_v36, %v203_v42  ;;  %v218_v44 = vmul.f32 %v216_v41, %v206_v38 }
  0xed   : > { %v215_v49 = vpop.xlane.xlu1 %214 }
  0xee   : > { %v255_v46 = vrot.slane %v207_v43, %v254_v29  ;;  %v220_v47 = vsub.f32 %v212_v39, %v218_v44  ;;  %v217_v48 = vmul.f32 %v207_v43, %v204_v34 }
  0xf0   : > { %v257_v50 = vsel %vm256_vm2, %v255_v46, %v250_v40  ;;  %v225_v51 = vmul.f32 %v450_v45, %v220_v47  ;;  %v219_v52 = vmul.f32 %v217_v48, %v207_v43 }
  0xf1   : > { %260 = vst.msk [vmem:[%s758_s14] sm:$0x1] %vm259_vm3, %v257_v50 }
  0xf2   : > { %v227_v53 = vmax.f32 %v225_v51, 0.0  ;;  %v221_v54 = vsub.f32 %v215_v49, %v219_v52 }
  0xf4   : > { %451 = vrsqrt.f32 %v227_v53  ;;  %v226_v55 = vmul.f32 %v450_v45, %v221_v54  ;;  %vm231_vm4 = vcmp.eq.f32.partialorder %v227_v53, inf  ;;  %v234_v59 = vand.u32 2147483648, %v227_v53 }
  0xf5   : > { %vm233_vm5 = vcmp.eq.f32.partialorder %v227_v53, 0.0 }
  0xf6   : > { %v228_v56 = vmax.f32 %v226_v55, 0.0 }
  0xf8   : > { %453 = vrsqrt.f32 %v228_v56  ;;  %vm238_vm6 = vcmp.eq.f32.partialorder %v228_v56, inf  ;;  %v241_v1 = vand.u32 2147483648, %v228_v56  ;;  %vm240_vm7 = vcmp.eq.f32.partialorder %v228_v56, 0.0 }
  0xfe   : > { %v452_v57 = vpop.eup %451 }
  0xff   : > { %v230_v58 = vmul.f32 %v452_v57, %v227_v53 }
 0x101   : > { %v232_v60 = vsel %vm231_vm4, %v227_v53, %v230_v58 }
 0x102   : > { %v454_v61 = vpop.eup %453  ;;  %v235_v62 = vsel %vm233_vm5, %v234_v59, %v232_v60 }
 0x103   : > { %v237_v63 = vmul.f32 %v454_v61, %v228_v56  ;;  %v243_v0 = vmax.f32 %v235_v62, 1e-10 }
 0x105   : > { %v239_v2 = vsel %vm238_vm6, %v228_v56, %v237_v63  ;;  %v267_v3 = vrot.slane %v243_v0, %v266_v31 }
 0x106   : > { %v242_v4 = vsel %vm240_vm7, %v241_v1, %v239_v2 }
 0x107   : > { %v244_v5 = vmax.f32 %v242_v4, 1e-10 }
 0x109   : > { %v272_v6 = vrot.slane %v244_v5, %v271_v33 }
 0x10b   : > { %v274_v7 = vsel %vm273_vm8, %v272_v6, %v267_v3 }
 0x10c   : > { %277 = vst.msk [vmem:[%s758_s14] sm:$0x1] %vm276_vm9, %v274_v7 }
 0x10d   : > { %508 = shalt.err (!%p505_p8)
}
 0x10e   : > { %s509_s8 = scalar_lea.hbm %s766_s27, 16  ;;  %s513_s12 = scalar_lea.hbm %s818_s2, 32 }
 0x10f   : > { %p510_p7 = scmp.ne.s32.totalorder %s766_s27, %s509_s8  ;;  %p514_p1 = scmp.lt.u32.totalorder %s766_s27, %s818_s2 }
 0x110   : > { %p515_p4 = scmp.lt.u32.totalorder %s513_s12, %s509_s8  ;;  %p517_p11 = scmp.lt.u32.totalorder %s509_s8, %s766_s27 }
 0x111   : > { %p511_p10 = pnand %p510_p7, %p826_p12 }
 0x112   : > { %p516_p6 = por %p515_p4, %p514_p1 }
 0x113   : > { %p512_p13 = pneg %p511_p10 }
 0x114   : > { %p518_p0 = por %p517_p11, %p516_p6 }
 0x116   : > { %p519_p3 = pnand %p518_p0, %p512_p13 }
 0x118   : > { %522 = shalt.err (!%p519_p3)
}
 0x119   : > { %383 = dma.vmem_to_hbm [thread:$0]  (%p826_p12), %s768_s18, 16, %s766_s27, %s279_s28  }
 0x11a PF: > { %s303_s11 = sand.u32 1, %s559_s19   ;;  %p827_p9 = scmp.ne.s32.totalorder %s823_s5, 0 }
 0x11b   : > { %p828_p2 = scmp.ge.s32.totalorder %s579_s24, 2  ;;  %s304_s30 = scalar_lea.sflag [#allocation8], %s303_s11 }
 0x11d   : > { %p390_p5 = pnand %p828_p2, %p827_p9 }
 0x11f   : > { %554 = dma.done.wait (!%p390_p5), %s304_s30, 16  }
 0x120   : > { %556 = vsyncadd (!%p390_p5), %s304_s30, 4294967280  ;;  %s22_s24 = sadd.s32 1, %s579_s24   ;;  %s829_s19 = smov %s563_s20 }
 0x121   : > { %p19_p8 = scmp.ge.s32.totalorder %s22_s24, 4   ;;  %s830_s20 = smov %s567_s21 }
 0x122   : > { %s831_s21 = smov %s670_s4  ;;  %s832_s22 = smov %s575_s23 }
 0x123   : > { %s833_s23 = smov %s835_s26  ;;  %21 = sbr.rel (!%p19_p8) target bundleno = 18 (0x12), region = 77 }
 0x12a   :  { %308 = vsyncpa [#allocation7], 1 }
 0x12b   :  { %310 = vsyncpa [#allocation7 + $0x1], 1 }
 0x12c   :  { %311 = vsyncpa [#allocation8], 1 }
 0x12d   :  { %313 = vsyncpa [#allocation8 + $0x1], 1 }

</bundles_post_ra>
